<compile_context>
chip_gen: v7x
topology: tpu7x:2x2x1
jax: 0.10.0
libtpu: 0.0.40
codegen_flags: <defaults>
</compile_context>

<pallas_src>
import functools

import jax
import jax.numpy as jnp
from jax.experimental import pallas as pl
from jax.experimental.pallas import tpu as pltpu


def _round_up(x, m):
    return (x + m - 1) // m * m


def mos_kernel(x_ref, wf_ref, bf_ref, o_ref, *, k, v, v_pad):
    """One row tile: pi softmax + K x (dot -> tanh -> FMA) -> log-softmax."""
    # Cast activations to the MXU dtype in-kernel (cheap VPU work hidden under
    # MXU slack; avoids a separate wrapper-level XLA cast pass over x).
    x = x_ref[...].astype(wf_ref.dtype)                            # (TM, H)

    # --- mixture weights: pi matmul on its lane-padded 128-column block -----
    pi_lo = k * v_pad
    pi = jnp.dot(x, wf_ref[:, pi_lo:pi_lo + 128],
                 preferred_element_type=jnp.float32)
    pi = pi + bf_ref[:, pi_lo:pi_lo + 128]                         # (TM, 128)
    col = jax.lax.broadcasted_iota(jnp.int32, pi.shape, dimension=1)
    pi = jnp.where(col < k, pi, -jnp.inf)                          # mask pad lanes
    pi = pi - jnp.max(pi, axis=-1, keepdims=True)
    pe = jnp.exp(pi)
    mix = pe * pl.reciprocal(jnp.sum(pe, axis=-1, keepdims=True), approx=True)

    # --- K heads: per-head dot -> tanh -> FMA into ONE (TM, Vp) accumulator --
    # Same total MXU FLOPs as a single wide dot, ~K x smaller live f32 state.
    acc = jnp.zeros((x.shape[0], v_pad), jnp.float32)
    for j in range(k):                                             # small, static
        h = jnp.dot(x, wf_ref[:, j * v_pad:(j + 1) * v_pad],
                    preferred_element_type=jnp.float32)
        h = jnp.tanh(h + bf_ref[:, j * v_pad:(j + 1) * v_pad])     # f32 (v5e-safe)
        acc = acc + mix[:, j:j + 1] * h

    # --- log-softmax over the output dim; mask padded vocab columns ---------
    if v_pad != v:
        colv = jax.lax.broadcasted_iota(jnp.int32, acc.shape, dimension=1)
        acc = jnp.where(colv < v, acc, -jnp.inf)
    m = jnp.max(acc, axis=-1, keepdims=True)
    z = acc - m
    lse = jnp.log(jnp.sum(jnp.exp(z), axis=-1, keepdims=True))
    o_ref[...] = (z - lse).astype(o_ref.dtype)


def prepare_mos_weights(wpi, bpi, W, b, *, matmul_dtype=jnp.bfloat16):
    """Fuse the K head weights + the pi weight into one lane-padded matrix.

    Call ONCE per parameter set (hoisted out of the per-step forward) so the
    K+1 scatters and the f32->bf16 cast are not paid on every call.
    Layout: columns [j*Vp, j*Vp+V) hold head j (Vp = round_up(V, 128));
    columns [K*Vp, K*Vp+K) hold the pi-logits weight; everything else is zero.
    """
    K, H, V = W.shape
    assert K <= 128, "pi block assumes k <= 128 mixture components"
    Vp = _round_up(V, 128)
    C = K * Vp + 128
    Wf = jnp.zeros((H, C), jnp.float32)
    bf = jnp.zeros((C,), jnp.float32)
    for j in range(K):
        Wf = Wf.at[:, j * Vp:j * Vp + V].set(W[j].astype(jnp.float32))
        bf = bf.at[j * Vp:j * Vp + V].set(b[j].astype(jnp.float32))
    Wf = Wf.at[:, K * Vp:K * Vp + K].set(wpi.astype(jnp.float32))
    bf = bf.at[K * Vp:K * Vp + K].set(bpi.astype(jnp.float32))
    return Wf.astype(matmul_dtype), bf.reshape(1, C)


def mixture_of_softmax_fused(data, Wf, bf, *, k, output_size, tile_rows=256):
    """data: (S, B, H) f32; Wf/bf from prepare_mos_weights.

    Returns log-probabilities of shape (S, B, output_size), float32.
    """
    S, B, H = data.shape
    C = Wf.shape[1]
    V = output_size
    Vp = (C - 128) // k
    N = S * B

    # --- row tiling: large sublane tiles; keep >= 2 grid steps when possible
    # so the ("parallel",) row axis can feed both TensorCores on v7x.
    n_tiles = pl.cdiv(N, tile_rows)
    if N >= 16:
        n_tiles = max(n_tiles, 2)
    TM = _round_up(pl.cdiv(N, n_tiles), 8)
    Np = _round_up(N, TM)
    grid = Np // TM

    x = data.reshape(N, H).astype(jnp.float32)   # stays f32; cast is in-kernel
    if Np != N:
        x = jnp.pad(x, ((0, Np - N), (0, 0)))

    # --- accurate VMEM budget (weights/bias single-buffered via Buffered(1)) -
    itm = jnp.dtype(Wf.dtype).itemsize
    vmem_need = (
        2 * TM * H * 4            # f32 activation tile, double-buffered
        + H * C * itm             # fused weights, single resident buffer
        + C * 4                   # fused bias, single resident buffer
        + 2 * TM * Vp * 4         # f32 output tile, double-buffered
        + 2 * TM * Vp * 4         # live f32: per-head result + accumulator
        + TM * 128 * 4            # live f32: pi / mix block
        + TM * H * (4 + itm)      # live: f32 x tile + its bf16 cast
    )
    try:
        vmem_cap = int(pltpu.get_tpu_info().vmem_capacity_bytes)
    except Exception:
        vmem_cap = 64 * 1024 * 1024   # v7x per-TC capacity: safe floor everywhere
    cp_kwargs = dict(dimension_semantics=("parallel",))
    if vmem_need > 16 * 1024 * 1024:
        cp_kwargs["vmem_limit_bytes"] = min(int(vmem_need * 5 // 4),
                                            vmem_cap * 7 // 8)

    flops = 2 * Np * H * C + 12 * Np * Vp
    transcendentals = Np * (k * Vp + Vp + 128)
    bytes_accessed = int(Np * H * 4 + H * C * itm + C * 4 + Np * Vp * 4)

    def run(single_buffer_weights):
        # Weights/bias have a constant index_map -> one resident buffer is
        # enough; Buffered(1) halves their VMEM footprint.
        wkw = (dict(pipeline_mode=pl.Buffered(1))
               if single_buffer_weights else {})
        return pl.pallas_call(
            functools.partial(mos_kernel, k=k, v=V, v_pad=Vp),
            out_shape=jax.ShapeDtypeStruct((Np, Vp), jnp.float32),
            grid_spec=pltpu.PrefetchScalarGridSpec(
                num_scalar_prefetch=0,
                grid=(grid,),
                in_specs=[
                    pl.BlockSpec((TM, H), lambda i: (i, 0)),     # activation rows
                    pl.BlockSpec((H, C), lambda i: (0, 0), **wkw),   # fused weights
                    pl.BlockSpec((1, C), lambda i: (0, 0), **wkw),   # fused bias
                ],
                out_specs=pl.BlockSpec((TM, Vp), lambda i: (i, 0)),  # lane-dense
            ),
            compiler_params=pltpu.CompilerParams(**cp_kwargs),
            cost_estimate=pl.CostEstimate(flops=int(flops),
                                          transcendentals=int(transcendentals),
                                          bytes_accessed=bytes_accessed),
        )(x, Wf, bf)

    try:
        out = run(True)
    except Exception:
        # Fallback for jax builds where Buffered(1) is rejected for pallas_call
        # pipelining: default double-buffering (correct, slightly more VMEM).
        out = run(False)

    return out[:N, :V].reshape(S, B, V)


def mixture_of_softmax(data, wpi, bpi, W, b, *, tile_rows=256,
                       matmul_dtype=jnp.bfloat16):
    """One-shot convenience wrapper (prefer hoisting prepare_mos_weights)."""
    K, _, V = W.shape
    Wf, bf = prepare_mos_weights(wpi, bpi, W, b, matmul_dtype=matmul_dtype)
    return mixture_of_softmax_fused(data, Wf, bf, k=K, output_size=V,
                                    tile_rows=tile_rows)


def mixture_of_softmax_ref(data, wpi, bpi, W, b):
    """Pure-JAX f32 reference of the same semantics."""
    pi = jax.nn.softmax(jnp.einsum("sbh,hk->sbk", data, wpi) + bpi, axis=-1)
    heads = jnp.tanh(jnp.einsum("sbh,khv->ksbv", data, W) + b[:, None, None, :])
    mixed = jnp.sum(jnp.moveaxis(pi, -1, 0)[..., None] * heads, axis=0)
    return jax.nn.log_softmax(mixed, axis=-1)


if __name__ == "__main__":
    # small shapes consistent with the module: seq=8, batch=2, hidden=32,
    # output_size=16, k=3 mixture components
    S, B, H, V, K = 8, 2, 32, 16, 3

    key = jax.random.PRNGKey(0)
    k_x, k_wpi, k_bpi, k_w, k_b = jax.random.split(key, 5)
    data = jax.random.normal(k_x, (S, B, H), dtype=jnp.float32)
    wpi = 0.1 * jax.random.normal(k_wpi, (H, K), dtype=jnp.float32)
    bpi = 0.1 * jax.random.normal(k_bpi, (K,), dtype=jnp.float32)
    W = 0.1 * jax.random.normal(k_w, (K, H, V), dtype=jnp.float32)
    b = 0.1 * jax.random.normal(k_b, (K, V), dtype=jnp.float32)

    # Weight fusion is hoisted out of the per-step forward (done once here).
    Wf, bf = prepare_mos_weights(wpi, bpi, W, b)
    Wf, bf = jax.block_until_ready((Wf, bf))

    out = mixture_of_softmax_fused(data, Wf, bf, k=K, output_size=V)
    out = jax.block_until_ready(out)

    ref = mixture_of_softmax_ref(data, wpi, bpi, W, b)
    assert out.shape == (S, B, V)
    assert bool(jnp.isfinite(out).all())
    # bf16 MXU operands + approx reciprocal => loosened (still tight) tolerance
    assert jnp.allclose(out, ref, atol=2e-2, rtol=2e-2)

    print("KERNEL_OK")
</pallas_src>

<mosaic_0001>
module attributes {stable_mosaic.version = 11 : i64} {
  func.func @mos_kernel(%arg0: i32, %arg1: memref<8x32xf32, #tpu.memory_space<vmem>>, %arg2: memref<32x512xbf16, #tpu.memory_space<vmem>>, %arg3: memref<1x512xf32, #tpu.memory_space<vmem>>, %arg4: memref<8x128xf32, #tpu.memory_space<vmem>>) attributes {dimension_semantics = [#tpu.dimension_semantics<parallel>], iteration_bounds = array<i64: 2>, scalar_prefetch = 0 : i64, scratch_operands = 0 : i64, tpu.core_type = #tpu.core_type<tc>, window_params = [{transform_indices = @transform_0, window_bounds = array<i64: 8, 32>}, {pipeline_mode = #tpu.pipeline_mode<synchronous>, transform_indices = @transform_1, window_bounds = array<i64: 32, 512>}, {pipeline_mode = #tpu.pipeline_mode<synchronous>, transform_indices = @transform_2, window_bounds = array<i64: 1, 512>}, {transform_indices = @transform_3, window_bounds = array<i64: 8, 128>}]} {
    %c0 = arith.constant 0 : index
    %c0_0 = arith.constant 0 : index
    %0 = vector.load %arg1[%c0, %c0_0] : memref<8x32xf32, #tpu.memory_space<vmem>>, vector<8x32xf32>
    %1 = arith.truncf %0 : vector<8x32xf32> to vector<8x32xbf16>
    %c0_1 = arith.constant 0 : index
    %c384 = arith.constant 384 : index
    %2 = vector.load %arg2[%c0_1, %c384] : memref<32x512xbf16, #tpu.memory_space<vmem>>, vector<32x128xbf16>
    %cst = arith.constant dense<0.000000e+00> : vector<8x128xf32>
    %3 = tpu.matmul %1, %2, %cst {dimension_numbers = #tpu.dot_dimension_numbers<[1], [0], [0], [1], [0, 0, 1, 1], [], []>} : vector<8x32xbf16>, vector<32x128xbf16>, vector<8x128xf32> -> vector<8x128xf32>
    %c0_2 = arith.constant 0 : index
    %c384_3 = arith.constant 384 : index
    %4 = vector.load %arg3[%c0_2, %c384_3] : memref<1x512xf32, #tpu.memory_space<vmem>>, vector<1x128xf32>
    %5 = vector.broadcast %4 : vector<1x128xf32> to vector<8x128xf32>
    %6 = arith.addf %3, %5 : vector<8x128xf32>
    %7 = tpu.iota {dimensions = array<i32: 1>} : vector<8x128xi32>
    %c3_i32 = arith.constant 3 : i32
    %8 = vector.broadcast %c3_i32 : i32 to vector<8x128xi32>
    %9 = arith.cmpi slt, %7, %8 : vector<8x128xi32>
    %cst_4 = arith.constant 0xFF800000 : f32
    %10 = vector.broadcast %cst_4 : f32 to vector<8x128xf32>
    %11 = arith.select %9, %6, %10 : vector<8x128xi1>, vector<8x128xf32>
    %cst_5 = arith.constant dense<0xFF800000> : vector<8xf32>
    %12 = vector.multi_reduction <maximumf>, %11, %cst_5 [1] : vector<8x128xf32> to vector<8xf32>
    %13 = vector.shape_cast %12 : vector<8xf32> to vector<8x1xf32>
    %14 = vector.broadcast %13 : vector<8x1xf32> to vector<8x128xf32>
    %15 = arith.subf %11, %14 : vector<8x128xf32>
    %16 = math.exp %15 : vector<8x128xf32>
    %cst_6 = arith.constant dense<0.000000e+00> : vector<8xf32>
    %17 = vector.multi_reduction <add>, %16, %cst_6 [1] : vector<8x128xf32> to vector<8xf32>
    %18 = vector.shape_cast %17 : vector<8xf32> to vector<8x1xf32>
    %19 = tpu.reciprocal %18 {approx = true} : vector<8x1xf32> -> vector<8x1xf32>
    %20 = vector.broadcast %19 : vector<8x1xf32> to vector<8x128xf32>
    %21 = arith.mulf %16, %20 : vector<8x128xf32>
    %cst_7 = arith.constant 0.000000e+00 : f32
    %22 = vector.broadcast %cst_7 : f32 to vector<8x128xf32>
    %c0_8 = arith.constant 0 : index
    %c0_9 = arith.constant 0 : index
    %23 = vector.load %arg2[%c0_8, %c0_9] : memref<32x512xbf16, #tpu.memory_space<vmem>>, vector<32x128xbf16>
    %cst_10 = arith.constant dense<0.000000e+00> : vector<8x128xf32>
    %24 = tpu.matmul %1, %23, %cst_10 {dimension_numbers = #tpu.dot_dimension_numbers<[1], [0], [0], [1], [0, 0, 1, 1], [], []>} : vector<8x32xbf16>, vector<32x128xbf16>, vector<8x128xf32> -> vector<8x128xf32>
    %c0_11 = arith.constant 0 : index
    %c0_12 = arith.constant 0 : index
    %25 = vector.load %arg3[%c0_11, %c0_12] : memref<1x512xf32, #tpu.memory_space<vmem>>, vector<1x128xf32>
    %26 = vector.broadcast %25 : vector<1x128xf32> to vector<8x128xf32>
    %27 = arith.addf %24, %26 : vector<8x128xf32>
    %28 = math.tanh %27 : vector<8x128xf32>
    %29 = vector.extract_strided_slice %21 {offsets = [0, 0], sizes = [8, 1], strides = [1, 1]} : vector<8x128xf32> to vector<8x1xf32>
    %30 = vector.broadcast %29 : vector<8x1xf32> to vector<8x128xf32>
    %31 = arith.mulf %30, %28 : vector<8x128xf32>
    %32 = arith.addf %22, %31 : vector<8x128xf32>
    %c0_13 = arith.constant 0 : index
    %c128 = arith.constant 128 : index
    %33 = vector.load %arg2[%c0_13, %c128] : memref<32x512xbf16, #tpu.memory_space<vmem>>, vector<32x128xbf16>
    %cst_14 = arith.constant dense<0.000000e+00> : vector<8x128xf32>
    %34 = tpu.matmul %1, %33, %cst_14 {dimension_numbers = #tpu.dot_dimension_numbers<[1], [0], [0], [1], [0, 0, 1, 1], [], []>} : vector<8x32xbf16>, vector<32x128xbf16>, vector<8x128xf32> -> vector<8x128xf32>
    %c0_15 = arith.constant 0 : index
    %c128_16 = arith.constant 128 : index
    %35 = vector.load %arg3[%c0_15, %c128_16] : memref<1x512xf32, #tpu.memory_space<vmem>>, vector<1x128xf32>
    %36 = vector.broadcast %35 : vector<1x128xf32> to vector<8x128xf32>
    %37 = arith.addf %34, %36 : vector<8x128xf32>
    %38 = math.tanh %37 : vector<8x128xf32>
    %39 = vector.extract_strided_slice %21 {offsets = [0, 1], sizes = [8, 1], strides = [1, 1]} : vector<8x128xf32> to vector<8x1xf32>
    %40 = vector.broadcast %39 : vector<8x1xf32> to vector<8x128xf32>
    %41 = arith.mulf %40, %38 : vector<8x128xf32>
    %42 = arith.addf %32, %41 : vector<8x128xf32>
    %c0_17 = arith.constant 0 : index
    %c256 = arith.constant 256 : index
    %43 = vector.load %arg2[%c0_17, %c256] : memref<32x512xbf16, #tpu.memory_space<vmem>>, vector<32x128xbf16>
    %cst_18 = arith.constant dense<0.000000e+00> : vector<8x128xf32>
    %44 = tpu.matmul %1, %43, %cst_18 {dimension_numbers = #tpu.dot_dimension_numbers<[1], [0], [0], [1], [0, 0, 1, 1], [], []>} : vector<8x32xbf16>, vector<32x128xbf16>, vector<8x128xf32> -> vector<8x128xf32>
    %c0_19 = arith.constant 0 : index
    %c256_20 = arith.constant 256 : index
    %45 = vector.load %arg3[%c0_19, %c256_20] : memref<1x512xf32, #tpu.memory_space<vmem>>, vector<1x128xf32>
    %46 = vector.broadcast %45 : vector<1x128xf32> to vector<8x128xf32>
    %47 = arith.addf %44, %46 : vector<8x128xf32>
    %48 = math.tanh %47 : vector<8x128xf32>
    %49 = vector.extract_strided_slice %21 {offsets = [0, 2], sizes = [8, 1], strides = [1, 1]} : vector<8x128xf32> to vector<8x1xf32>
    %50 = vector.broadcast %49 : vector<8x1xf32> to vector<8x128xf32>
    %51 = arith.mulf %50, %48 : vector<8x128xf32>
    %52 = arith.addf %42, %51 : vector<8x128xf32>
    %53 = tpu.iota {dimensions = array<i32: 1>} : vector<8x128xi32>
    %c16_i32 = arith.constant 16 : i32
    %54 = vector.broadcast %c16_i32 : i32 to vector<8x128xi32>
    %55 = arith.cmpi slt, %53, %54 : vector<8x128xi32>
    %cst_21 = arith.constant 0xFF800000 : f32
    %56 = vector.broadcast %cst_21 : f32 to vector<8x128xf32>
    %57 = arith.select %55, %52, %56 : vector<8x128xi1>, vector<8x128xf32>
    %cst_22 = arith.constant dense<0xFF800000> : vector<8xf32>
    %58 = vector.multi_reduction <maximumf>, %57, %cst_22 [1] : vector<8x128xf32> to vector<8xf32>
    %59 = vector.shape_cast %58 : vector<8xf32> to vector<8x1xf32>
    %60 = vector.broadcast %59 : vector<8x1xf32> to vector<8x128xf32>
    %61 = arith.subf %57, %60 : vector<8x128xf32>
    %62 = math.exp %61 : vector<8x128xf32>
    %cst_23 = arith.constant dense<0.000000e+00> : vector<8xf32>
    %63 = vector.multi_reduction <add>, %62, %cst_23 [1] : vector<8x128xf32> to vector<8xf32>
    %64 = vector.shape_cast %63 : vector<8xf32> to vector<8x1xf32>
    %65 = math.log %64 : vector<8x1xf32>
    %66 = vector.broadcast %65 : vector<8x1xf32> to vector<8x128xf32>
    %67 = arith.subf %61, %66 : vector<8x128xf32>
    %c0_24 = arith.constant 0 : index
    %c0_25 = arith.constant 0 : index
    %68 = vector.load %arg4[%c0_24, %c0_25] : memref<8x128xf32, #tpu.memory_space<vmem>>, vector<8x128xf32>
    tpu.vector_store %arg4[%c0_24, %c0_25], %67 {strides = array<i32>} : memref<8x128xf32, #tpu.memory_space<vmem>>, vector<8x128xf32>,
    return
  }
  func.func @transform_0(%arg0: i32) -> (i32, i32) {
    %c0_i32 = arith.constant 0 : i32
    %c0_i32_0 = arith.constant 0 : i32
    return %arg0, %c0_i32 : i32, i32
  }
  func.func @transform_1(%arg0: i32) -> (i32, i32) {
    %c0_i32 = arith.constant 0 : i32
    %c0_i32_0 = arith.constant 0 : i32
    %c0_i32_1 = arith.constant 0 : i32
    return %c0_i32, %c0_i32_0 : i32, i32
  }
  func.func @transform_2(%arg0: i32) -> (i32, i32) {
    %c0_i32 = arith.constant 0 : i32
    %c0_i32_0 = arith.constant 0 : i32
    %c0_i32_1 = arith.constant 0 : i32
    return %c0_i32, %c0_i32_0 : i32, i32
  }
  func.func @transform_3(%arg0: i32) -> (i32, i32) {
    %c0_i32 = arith.constant 0 : i32
    %c0_i32_0 = arith.constant 0 : i32
    return %arg0, %c0_i32 : i32, i32
  }
}

module attributes {stable_mosaic.version = 11 : i64} {
  func.func @mos_kernel(%arg0: i32, %arg1: memref<8x32xf32, #tpu.memory_space<vmem>>, %arg2: memref<32x512xbf16, #tpu.memory_space<vmem>>, %arg3: memref<1x512xf32, #tpu.memory_space<vmem>>, %arg4: memref<8x128xf32, #tpu.memory_space<vmem>>) attributes {dimension_semantics = [#tpu.dimension_semantics<parallel>], iteration_bounds = array<i64: 2>, scalar_prefetch = 0 : i64, scratch_operands = 0 : i64, tpu.core_type = #tpu.core_type<tc>, window_params = [{transform_indices = @transform_0, window_bounds = array<i64: 8, 32>}, {pipeline_mode = #tpu.pipeline_mode<synchronous>, transform_indices = @transform_1, window_bounds = array<i64: 32, 512>}, {pipeline_mode = #tpu.pipeline_mode<synchronous>, transform_indices = @transform_2, window_bounds = array<i64: 1, 512>}, {transform_indices = @transform_3, window_bounds = array<i64: 8, 128>}]} {
    %c0 = arith.constant 0 : index
    %c0_0 = arith.constant 0 : index
    %0 = vector.load %arg1[%c0, %c0_0] : memref<8x32xf32, #tpu.memory_space<vmem>>, vector<8x32xf32>
    %1 = arith.truncf %0 : vector<8x32xf32> to vector<8x32xbf16>
    %c0_1 = arith.constant 0 : index
    %c384 = arith.constant 384 : index
    %2 = vector.load %arg2[%c0_1, %c384] : memref<32x512xbf16, #tpu.memory_space<vmem>>, vector<32x128xbf16>
    %cst = arith.constant dense<0.000000e+00> : vector<8x128xf32>
    %3 = tpu.matmul %1, %2, %cst {dimension_numbers = #tpu.dot_dimension_numbers<[1], [0], [0], [1], [0, 0, 1, 1], [], []>} : vector<8x32xbf16>, vector<32x128xbf16>, vector<8x128xf32> -> vector<8x128xf32>
    %c0_2 = arith.constant 0 : index
    %c384_3 = arith.constant 384 : index
    %4 = vector.load %arg3[%c0_2, %c384_3] : memref<1x512xf32, #tpu.memory_space<vmem>>, vector<1x128xf32>
    %5 = vector.broadcast %4 : vector<1x128xf32> to vector<8x128xf32>
    %6 = arith.addf %3, %5 : vector<8x128xf32>
    %7 = tpu.iota {dimensions = array<i32: 1>} : vector<8x128xi32>
    %c3_i32 = arith.constant 3 : i32
    %8 = vector.broadcast %c3_i32 : i32 to vector<8x128xi32>
    %9 = arith.cmpi slt, %7, %8 : vector<8x128xi32>
    %cst_4 = arith.constant 0xFF800000 : f32
    %10 = vector.broadcast %cst_4 : f32 to vector<8x128xf32>
    %11 = arith.select %9, %6, %10 : vector<8x128xi1>, vector<8x128xf32>
    %cst_5 = arith.constant dense<0xFF800000> : vector<8xf32>
    %12 = vector.multi_reduction <maximumf>, %11, %cst_5 [1] : vector<8x128xf32> to vector<8xf32>
    %13 = vector.shape_cast %12 : vector<8xf32> to vector<8x1xf32>
    %14 = vector.broadcast %13 : vector<8x1xf32> to vector<8x128xf32>
    %15 = arith.subf %11, %14 : vector<8x128xf32>
    %16 = math.exp %15 : vector<8x128xf32>
    %cst_6 = arith.constant dense<0.000000e+00> : vector<8xf32>
    %17 = vector.multi_reduction <add>, %16, %cst_6 [1] : vector<8x128xf32> to vector<8xf32>
    %18 = vector.shape_cast %17 : vector<8xf32> to vector<8x1xf32>
    %19 = tpu.reciprocal %18 {approx = true} : vector<8x1xf32> -> vector<8x1xf32>
    %20 = vector.broadcast %19 : vector<8x1xf32> to vector<8x128xf32>
    %21 = arith.mulf %16, %20 : vector<8x128xf32>
    %cst_7 = arith.constant 0.000000e+00 : f32
    %22 = vector.broadcast %cst_7 : f32 to vector<8x128xf32>
    %c0_8 = arith.constant 0 : index
    %c0_9 = arith.constant 0 : index
    %23 = vector.load %arg2[%c0_8, %c0_9] : memref<32x512xbf16, #tpu.memory_space<vmem>>, vector<32x128xbf16>
    %cst_10 = arith.constant dense<0.000000e+00> : vector<8x128xf32>
    %24 = tpu.matmul %1, %23, %cst_10 {dimension_numbers = #tpu.dot_dimension_numbers<[1], [0], [0], [1], [0, 0, 1, 1], [], []>} : vector<8x32xbf16>, vector<32x128xbf16>, vector<8x128xf32> -> vector<8x128xf32>
    %c0_11 = arith.constant 0 : index
    %c0_12 = arith.constant 0 : index
    %25 = vector.load %arg3[%c0_11, %c0_12] : memref<1x512xf32, #tpu.memory_space<vmem>>, vector<1x128xf32>
    %26 = vector.broadcast %25 : vector<1x128xf32> to vector<8x128xf32>
    %27 = arith.addf %24, %26 : vector<8x128xf32>
    %28 = math.tanh %27 : vector<8x128xf32>
    %29 = vector.extract_strided_slice %21 {offsets = [0, 0], sizes = [8, 1], strides = [1, 1]} : vector<8x128xf32> to vector<8x1xf32>
    %30 = vector.broadcast %29 : vector<8x1xf32> to vector<8x128xf32>
    %31 = arith.mulf %30, %28 : vector<8x128xf32>
    %32 = arith.addf %22, %31 : vector<8x128xf32>
    %c0_13 = arith.constant 0 : index
    %c128 = arith.constant 128 : index
    %33 = vector.load %arg2[%c0_13, %c128] : memref<32x512xbf16, #tpu.memory_space<vmem>>, vector<32x128xbf16>
    %cst_14 = arith.constant dense<0.000000e+00> : vector<8x128xf32>
    %34 = tpu.matmul %1, %33, %cst_14 {dimension_numbers = #tpu.dot_dimension_numbers<[1], [0], [0], [1], [0, 0, 1, 1], [], []>} : vector<8x32xbf16>, vector<32x128xbf16>, vector<8x128xf32> -> vector<8x128xf32>
    %c0_15 = arith.constant 0 : index
    %c128_16 = arith.constant 128 : index
    %35 = vector.load %arg3[%c0_15, %c128_16] : memref<1x512xf32, #tpu.memory_space<vmem>>, vector<1x128xf32>
    %36 = vector.broadcast %35 : vector<1x128xf32> to vector<8x128xf32>
    %37 = arith.addf %34, %36 : vector<8x128xf32>
    %38 = math.tanh %37 : vector<8x128xf32>
    %39 = vector.extract_strided_slice %21 {offsets = [0, 1], sizes = [8, 1], strides = [1, 1]} : vector<8x128xf32> to vector<8x1xf32>
    %40 = vector.broadcast %39 : vector<8x1xf32> to vector<8x128xf32>
    %41 = arith.mulf %40, %38 : vector<8x128xf32>
    %42 = arith.addf %32, %41 : vector<8x128xf32>
    %c0_17 = arith.constant 0 : index
    %c256 = arith.constant 256 : index
    %43 = vector.load %arg2[%c0_17, %c256] : memref<32x512xbf16, #tpu.memory_space<vmem>>, vector<32x128xbf16>
    %cst_18 = arith.constant dense<0.000000e+00> : vector<8x128xf32>
    %44 = tpu.matmul %1, %43, %cst_18 {dimension_numbers = #tpu.dot_dimension_numbers<[1], [0], [0], [1], [0, 0, 1, 1], [], []>} : vector<8x32xbf16>, vector<32x128xbf16>, vector<8x128xf32> -> vector<8x128xf32>
    %c0_19 = arith.constant 0 : index
    %c256_20 = arith.constant 256 : index
    %45 = vector.load %arg3[%c0_19, %c256_20] : memref<1x512xf32, #tpu.memory_space<vmem>>, vector<1x128xf32>
    %46 = vector.broadcast %45 : vector<1x128xf32> to vector<8x128xf32>
    %47 = arith.addf %44, %46 : vector<8x128xf32>
    %48 = math.tanh %47 : vector<8x128xf32>
    %49 = vector.extract_strided_slice %21 {offsets = [0, 2], sizes = [8, 1], strides = [1, 1]} : vector<8x128xf32> to vector<8x1xf32>
    %50 = vector.broadcast %49 : vector<8x1xf32> to vector<8x128xf32>
    %51 = arith.mulf %50, %48 : vector<8x128xf32>
    %52 = arith.addf %42, %51 : vector<8x128xf32>
    %53 = tpu.iota {dimensions = array<i32: 1>} : vector<8x128xi32>
    %c16_i32 = arith.constant 16 : i32
    %54 = vector.broadcast %c16_i32 : i32 to vector<8x128xi32>
    %55 = arith.cmpi slt, %53, %54 : vector<8x128xi32>
    %cst_21 = arith.constant 0xFF800000 : f32
    %56 = vector.broadcast %cst_21 : f32 to vector<8x128xf32>
    %57 = arith.select %55, %52, %56 : vector<8x128xi1>, vector<8x128xf32>
    %cst_22 = arith.constant dense<0xFF800000> : vector<8xf32>
    %58 = vector.multi_reduction <maximumf>, %57, %cst_22 [1] : vector<8x128xf32> to vector<8xf32>
    %59 = vector.shape_cast %58 : vector<8xf32> to vector<8x1xf32>
    %60 = vector.broadcast %59 : vector<8x1xf32> to vector<8x128xf32>
    %61 = arith.subf %57, %60 : vector<8x128xf32>
    %62 = math.exp %61 : vector<8x128xf32>
    %cst_23 = arith.constant dense<0.000000e+00> : vector<8xf32>
    %63 = vector.multi_reduction <add>, %62, %cst_23 [1] : vector<8x128xf32> to vector<8xf32>
    %64 = vector.shape_cast %63 : vector<8xf32> to vector<8x1xf32>
    %65 = math.log %64 : vector<8x1xf32>
    %66 = vector.broadcast %65 : vector<8x1xf32> to vector<8x128xf32>
    %67 = arith.subf %61, %66 : vector<8x128xf32>
    %c0_24 = arith.constant 0 : index
    %c0_25 = arith.constant 0 : index
    %68 = vector.load %arg4[%c0_24, %c0_25] : memref<8x128xf32, #tpu.memory_space<vmem>>, vector<8x128xf32>
    tpu.vector_store %arg4[%c0_24, %c0_25], %67 {strides = array<i32>} : memref<8x128xf32, #tpu.memory_space<vmem>>, vector<8x128xf32>,
    return
  }
  func.func @transform_0(%arg0: i32) -> (i32, i32) {
    %c0_i32 = arith.constant 0 : i32
    %c0_i32_0 = arith.constant 0 : i32
    return %arg0, %c0_i32 : i32, i32
  }
  func.func @transform_1(%arg0: i32) -> (i32, i32) {
    %c0_i32 = arith.constant 0 : i32
    %c0_i32_0 = arith.constant 0 : i32
    %c0_i32_1 = arith.constant 0 : i32
    return %c0_i32, %c0_i32_0 : i32, i32
  }
  func.func @transform_2(%arg0: i32) -> (i32, i32) {
    %c0_i32 = arith.constant 0 : i32
    %c0_i32_0 = arith.constant 0 : i32
    %c0_i32_1 = arith.constant 0 : i32
    return %c0_i32, %c0_i32_0 : i32, i32
  }
  func.func @transform_3(%arg0: i32) -> (i32, i32) {
    %c0_i32 = arith.constant 0 : i32
    %c0_i32_0 = arith.constant 0 : i32
    return %arg0, %c0_i32 : i32, i32
  }
}

</mosaic_0001>

<bundles_post_ra>
// kernel: tpu_custom_call.1
= control target key start
LH: loop header
LB: loop body
LE: loop exit
PB: predicated region body
PF: predicated region fallthrough
CT: control target
= control target key end

     0   :  { %8 = vsyncpa [#allocation3], 0  ;;  %s1149_s0 = inlined_call_operand.hbm [shape: f32[16,32], index: 0, kind: input, shape index: {}]   ;;  %s1150_s1 = inlined_call_operand.hbm [shape: bf16[32,512], index: 1, kind: input, shape index: {}]   ;;  %s1151_s2 = inlined_call_operand.vmem [shape: f32[1,512], index: 2, kind: input, shape index: {}]   ;;  %s1152_s3 = inlined_call_operand.hbm [shape: f32[16,128], index: 3, kind: output, shape index: {}]  }
   0x1   :  { %10 = vsyncpa [#allocation3 + $0x1], 0 }
   0x2   :  { %11 = vsyncpa [#allocation6], 0 }
   0x3   :  { %12 = vsyncpa [#allocation4], 0 }
   0x4   :  { %14 = vsyncpa [#allocation4 + $0x1], 0  ;;  %s925_s12 = smov 0   ;;  %s927_s13 = smov 0  }
   0x5   :  { %s929_s14 = smov 0   ;;  %s931_s15 = smov 0  }
   0x6 LB: > { %s946_s16 = sadd.s32 4294967295, %s893_s15   ;;  %s602_s17 = sadd.s32 4294967294, %s893_s15   ;;  %s893_s15 = sphi %s931_s15, %s1172_s15   ;;  %s889_s14 = sphi %s929_s14, %s1171_s14   ;;  %s885_s13 = sphi %s927_s13, %s1170_s13   ;;  %s881_s12 = sphi %s925_s12, %s1169_s12  }
   0x7   : > { %p40_p0 = scmp.ne.s32.totalorder %s885_s13, %s881_s12  ;;  %p1153_p1 = scmp.eq.s32.totalorder %s946_s16, 0 }
   0x8   : > { %p112_p3 = scmp.eq.s32.totalorder %s602_s17, 1  ;;  %p603_p5 = scmp.ge.s32.totalorder %s893_s15, 1 }
   0x9   : > { %p955_p4 = por %p1153_p1, %p40_p0  ;;  %p119_p7 = scmp.lt.s32.totalorder %s893_s15, 3 }
   0xa   : > { %p960_p6 = por %p112_p3, %p40_p0  ;;  %s895_s21 = smov [#allocation5]  }
   0xb   : > { %s1156_s18 = scalar_select %p955_p4, 1, 0 }
   0xc   : > { %s1157_s19 = scalar_select %p960_p6, 1, 0 }
   0xd   : > { %p965_p8 = pnand %p603_p5, %p119_p7  ;;  %s131_s22 = sshll.u32 %s895_s21, 4  ;;  %s969_s22 = int_to_ptr.vmem [resolvable:$true] %s131_s22 }
   0xe   : > { %s981_s24 = sadd.s32 1, %s893_s15   ;;  %s27_s25 = sadd.s32 1, %s889_s14 }
   0xf   : > { %s1158_s20 = scalar_select %p965_p8, 1, 0 }
  0x10   : > { %p684_p9 = pneg %p965_p8  ;;  %s24_s26 = ssub.s32 %s893_s15, %s981_s24 }
  0x11   : > { %s765_s29 = scalar_lea.hbm %s1150_s1, 1024 }
  0x12   : > { %p976_p11 = pnand %p684_p9, %p1153_p1  ;;  %p766_p12 = scmp.ne.s32.totalorder %s1150_s1, %s765_s29 }
  0x13   : > { %p772_p5 = scmp.lt.u32.totalorder %s765_s29, %s1150_s1 }
  0x14   : > { %p767_p13 = pneg %p976_p11 }
  0x16   : > { %p768_p0 = pnand %p767_p13, %p766_p12 }
  0x18   : > { %p769_p3 = pneg %p768_p0 }
  0x1a   : > { %p774_p7 = pnand %p772_p5, %p769_p3 }
  0x1c   : > { %777 = shalt.err (!%p774_p7)
}
  0x1d   : > { %s778_s7 = scalar_lea.vmem %s969_s22, 1024  ;;  %p786_p2 = scmp.lt.s32.totalorder %s969_s22, %s969_s22 }
  0x1e   : > { %p779_p9 = scmp.ne.s32.totalorder %s969_s22, %s778_s7  ;;  %p787_p6 = scmp.lt.s32.totalorder %s778_s7, %s778_s7 }
  0x20   : > { %p781_p10 = pnand %p779_p9, %p767_p13  ;;  %p788_p4 = por %p787_p6, %p786_p2 }
  0x22   : > { %p782_p1 = pneg %p781_p10 }
  0x24   : > { %p789_p8 = pnand %p788_p4, %p782_p1 }
  0x26   : > { %792 = shalt.err (!%p789_p8)
}
  0x27   : > { %s896_s8 = smov 256   ;;  %s897_s9 = smov 16  }
  0x28   : > { %687 = dma.hbm_to_vmem [thread:$0]  (!%p976_p11), %s1150_s1, 1024, %s969_s22, [#allocation6], %s896_s8, %s896_s8, %s897_s9  }
  0x29   : > { %p25_p2 = scmp.eq.s32.totalorder %s24_s26, 0  ;;  %p34_p1 = scmp.ne.s32.totalorder %s889_s14, %s885_s13 }
  0x2a   : > { %p35_p4 = scmp.eq.s32.totalorder %s893_s15, 0  ;;  %p697_p6 = scmp.lt.s32.totalorder %s893_s15, 2 }
  0x2b   : > { %s1012_s17 = scalar_select %p25_p2, %s889_s14, %s27_s25  }
  0x2c   : > { %p36_p8 = por %p35_p4, %p34_p1  ;;  %p1160_p10 = scmp.eq.s32.totalorder %s946_s16, 1 }
  0x2d   : > { %s148_s27 = sand.u32 1, %s889_s14   ;;  %s607_s28 = sshll.u32 %s893_s15, 7 }
  0x2e   : > { %p1016_p12 = por %p1160_p10, %p34_p1  ;;  %s606_s29 = sshll.u32 %s148_s27, 3 }
  0x2f   : > { %s1025_s4 = scalar_lea.hbm %s1149_s0, %s607_s28  ;;  %s152_s22 = scalar_lea.vmem [#allocation2], %s606_s29 }
  0x30   : > { %s159_s25 = sshll.u32 %s152_s22, 4  ;;  %p1027_p11 = pnand %p697_p6, %p36_p8  ;;  %s1031_s25 = int_to_ptr.vmem [resolvable:$true] %s159_s25 }
  0x31   : > { %s149_s5 = scalar_lea.sflag [#allocation3], %s148_s27  ;;  %s793_s6 = scalar_lea.hbm %s1025_s4, 128 }
  0x32   : > { %p794_p13 = scmp.ne.s32.totalorder %s1025_s4, %s793_s6  ;;  %p795_p0 = pneg %p1027_p11 }
  0x33   : > { %s798_s9 = scalar_lea.hbm %s1149_s0, 256  ;;  %p799_p7 = scmp.lt.u32.totalorder %s1025_s4, %s1149_s0 }
  0x34   : > { %p796_p3 = pnand %p795_p0, %p794_p13  ;;  %p800_p9 = scmp.lt.u32.totalorder %s798_s9, %s793_s6 }
  0x35   : > { %p802_p1 = scmp.lt.u32.totalorder %s793_s6, %s1025_s4 }
  0x36   : > { %p797_p5 = pneg %p796_p3  ;;  %p801_p2 = por %p800_p9, %p799_p7 }
  0x38   : > { %p803_p4 = por %p802_p1, %p801_p2 }
  0x3a   : > { %p804_p6 = pnand %p803_p4, %p797_p5 }
  0x3c   : > { %807 = shalt.err (!%p804_p6)
}
  0x3d   : > { %s808_s27 = scalar_lea.vmem %s1031_s25, 128  ;;  %s898_s28 = smov [#allocation2]  }
  0x3e   : > { %p809_p8 = scmp.ne.s32.totalorder %s1031_s25, %s808_s27  ;;  %s813_s29 = sshll.u32 %s898_s28, 4  ;;  %s814_s29 = int_to_ptr.vmem [resolvable:$false] %s813_s29 }
  0x3f   : > { %s815_s23 = scalar_lea.vmem %s814_s29, 256  ;;  %p816_p3 = scmp.lt.s32.totalorder %s1031_s25, %s814_s29 }
  0x40   : > { %p811_p10 = pnand %p809_p8, %p795_p0  ;;  %p817_p7 = scmp.lt.s32.totalorder %s815_s23, %s808_s27 }
  0x42   : > { %p812_p13 = pneg %p811_p10  ;;  %p818_p9 = por %p817_p7, %p816_p3 }
  0x44   : > { %p819_p2 = pnand %p818_p9, %p812_p13 }
  0x46   : > { %822 = shalt.err (!%p819_p2)
}
  0x47   : > { %691 = dma.hbm_to_vmem [thread:$0]  (!%p1027_p11), %s1025_s4, 128, %s1031_s25, %s149_s5  }
  0x48   : > { %p1163_p5 = scmp.ne.s32.totalorder %s1158_s20, 0 }
  0x49   : > { %s1061_s30 = sand.u32 (!%p1163_p5), 1, %s885_s13   ;;  %p1164_p0 = scmp.ne.s32.totalorder (!%p1163_p5), %s1156_s18, 0 }
  0x4a   : > { %168 = sbr.rel (%p1163_p5) target bundleno = 1090 (0x442), region = 32  ;;  %s609_s22 = sshll.u32 (!%p1163_p5), %s1061_s30, 3 }
  0x4b   : > { %s171_s6 = scalar_lea.sflag (!%p1163_p5), [#allocation3], %s1061_s30  ;;  %s174_s7 = scalar_lea.vmem (!%p1163_p5), [#allocation2], %s609_s22 }
  0x51   : > { %868 = dma.done.wait (%p1164_p0), %s171_s6, 128  }
  0x52   : > { %870 = vsyncadd (%p1164_p0), %s171_s6, 4294967168  ;;  %p1165_p11 = scmp.eq.s32.totalorder %s946_s16, 0 }
  0x54   : > { %872 = dma.done.wait (%p1165_p11), [#allocation6], 1024   ;;  %p1166_p1 = pmov %p1165_p11 }
  0x55   : > { %v899_v0 = vmov 0.0   ;;  %vm900_vm0 = vmmov 0   ;;  %v743_v1 = vld [vmem:[#allocation5 + $0xc] ss:$16 sps:$4 sm:$0xff]   ;;  %vm227_vm1 = vcmask 261120   ;;  %v271_v5 = vlaneseq  ;;  %s629_s10 = sshll.u32 %s946_s16, 7 }
  0x56   : > { %874 = vsyncadd (%p1166_p1), [#allocation6], 4294966272  ;;  %644 = vmatprep.subr.bf16.mxu0 %v899_v0  ;;  %648 = vmatprep.mubr.msk.bf16.mxu0 %vm900_vm0, %v899_v0  ;;  %v744_v2 = vld [vmem:[#allocation5 + $0x2c] ss:$16 sps:$4 sm:$0xff]   ;;  %v612_v7 = vld [vmem:[%s1151_s2 + $0x3] ss:$0 sm:$0xff]  ;;  %s1105_s23 = scalar_lea.hbm %s1152_s3, %s629_s10 }
  0x57   : > { %652 = vmatprep.subr.bf16.mxu1 %v899_v0  ;;  %656 = vmatprep.mubr.msk.bf16.mxu1 %vm900_vm0, %v899_v0  ;;  %v202_v3 = vld [vmem:[%s174_s7] sm:$0xff]  ;;  %v1079_v6 = vand.u32 127, %v271_v5  ;;  %v901_v24 = vmov 2   ;;  %v902_v25 = vmov 0   ;;  %v903_v41 = vmov 1   ;;  %s200_s11 = scalar_lea.vmem [#allocation7], %s609_s22 }
  0x58   : > { %645 = vmatpush3.bf16.msra.mxu0 %v743_v1  ;;  %v203_v4 = vpack.c.bf16 %v202_v3, %v202_v3  ;;  %v745_v14 = vld [vmem:[#allocation5] ss:$16 sps:$4 sm:$0xff]   ;;  %v748_v15 = vld [vmem:[#allocation5 + $0x4] ss:$16 sps:$4 sm:$0xff]   ;;  %v747_v18 = vld [vmem:[#allocation5 + $0x8] ss:$16 sps:$4 sm:$0xff]   ;;  %742 = vset.pattern.permute.xlu0 %v901_v24 }
  0x59   : > { %646 = vmatprep.subr.bf16.mxu0 %v899_v0  ;;  %vm273_vm2 = vcmp.lt.s32.totalorder %v1079_v6, 3  ;;  %653 = vmatpush3.bf16.msra.mxu1 %v745_v14  ;;  %v746_v16 = vld [vmem:[#allocation5 + $0x20] ss:$16 sps:$4 sm:$0xff]   ;;  %v750_v17 = vld [vmem:[#allocation5 + $0x24] ss:$16 sps:$4 sm:$0xff]   ;;  %vm495_vm3 = vcmp.lt.s32.totalorder %v1079_v6, 16 }
  0x5a   : > { %654 = vmatprep.subr.bf16.mxu1 %v899_v0  ;;  %v749_v19 = vld [vmem:[#allocation5 + $0x28] ss:$16 sps:$4 sm:$0xff]   ;;  %740 = vset.pattern.permute.xlu1 %v902_v25  ;;  %v616_v42 = vld [vmem:[%s1151_s2] ss:$0 sm:$0xff]  ;;  %v620_v43 = vld [vmem:[%s1151_s2 + $0x1] ss:$0 sm:$0xff] }
  0x5b   : > { %v624_v45 = vld [vmem:[%s1151_s2 + $0x2] ss:$0 sm:$0xff]  ;;  %s522_s27 = sshll.u32 %s200_s11, 4  ;;  %s509_s6 = scalar_lea.sflag [#allocation4], %s1061_s30  ;;  %s1107_s27 = int_to_ptr.vmem [resolvable:$true] %s522_s27 }
  0x5c   : > { %647 = vmatpush3.bf16.msra.mxu0 %v744_v2  ;;  %s823_s7 = scalar_lea.vmem %s1107_s27, 128  ;;  %s904_s16 = smov [#allocation7]  }
  0x5d   : > { %660 = vmatprep.subr.bf16.mxu0 %v899_v0  ;;  %655 = vmatpush3.bf16.msra.mxu1 %v746_v16  ;;  %p824_p4 = scmp.ne.s32.totalorder %s1107_s27, %s823_s7  ;;  %s827_s22 = sshll.u32 %s904_s16, 4  ;;  %s828_s22 = int_to_ptr.vmem [resolvable:$false] %s827_s22 }
  0x5e   : > { %668 = vmatprep.subr.bf16.mxu1 %v899_v0  ;;  %s829_s18 = scalar_lea.vmem %s828_s22, 256  ;;  %p830_p10 = scmp.lt.s32.totalorder %s1107_s27, %s828_s22 }
  0x5f   : > { %649 = vmatmul.mubr.msk.bf16.vlgmr.msra.gmra.mrb[0].mxu0 %vm227_vm1, %v203_v4  ;;  %p825_p6 = pnand %p824_p4, %p1016_p12  ;;  %p831_p13 = scmp.lt.s32.totalorder %s829_s18, %s823_s7 }
  0x60   : > { %664 = vmatprep.mubr.msk.bf16.mxu0 %vm900_vm0, %v899_v0  ;;  %661 = vmatpush3.bf16.msra.mxu0 %v748_v15 }
  0x61   : > { %662 = vmatprep.subr.bf16.mxu0 %v899_v0  ;;  %657 = vmatmul.mubr.msk.bf16.vlgmr.msra.gmra.mrb[0].mxu1 %vm227_vm1, %v203_v4  ;;  %p826_p8 = pneg %p825_p6  ;;  %p832_p3 = por %p831_p13, %p830_p10 }
  0x62   : > { %669 = vmatpush3.bf16.msra.mxu1 %v747_v18  ;;  %672 = vmatprep.mubr.msk.bf16.mxu1 %vm900_vm0, %v899_v0 }
  0x63   : > { %670 = vmatprep.subr.bf16.mxu1 %v899_v0  ;;  %p833_p7 = pnand %p832_p3, %p826_p8 }
  0x64   : > { %663 = vmatpush3.bf16.msra.mxu0 %v750_v17 }
  0x66   : > { %671 = vmatpush3.bf16.msra.mxu1 %v749_v19 }
  0x67   : > { %665 = vmatmul.mubr.msk.bf16.vlgmr.msra.gmra.mrb[4].mxu0 %vm227_vm1, %v203_v4 }
  0x69   : > { %673 = vmatmul.mubr.msk.bf16.vlgmr.msra.gmra.mrb[4].mxu1 %vm227_vm1, %v203_v4 }
 0x132   : > { %v265_v8 = vpop.f32.mrb[0].mxu0 }
 0x133   : > { %v266_v9 = vadd.f32 %v612_v7, %v265_v8  ;;  %v650_v10 = vpop.f32.mrb[1].mxu0 }
 0x134   : > { %v268_v11 = vpop.f32.mrb[2].mxu0  ;;  %v341_v26 = vpop.f32.mrb[0].mxu1 }
 0x135   : > { %v651_v12 = vpop.f32.mrb[3].mxu0  ;;  %v274_v13 = vsel %vm273_vm2, %v266_v9, -inf  ;;  %v658_v27 = vpop.f32.mrb[1].mxu1  ;;  %v342_v44 = vadd.f32 %v616_v42, %v341_v26 }
 0x136   : > { %275 = vmax.xlane.f32.xlu0 %v274_v13  ;;  %v344_v28 = vpop.f32.mrb[2].mxu1 }
 0x137   : > { %v659_v30 = vpop.f32.mrb[3].mxu1 }
 0x13a   : > { %v412_v29 = vpop.f32.mrb[4].mxu0 }
 0x13b   : > { %v666_v31 = vpop.f32.mrb[5].mxu0  ;;  %v413_v46 = vadd.f32 %v620_v43, %v412_v29 }
 0x13c   : > { %v415_v32 = vpop.f32.mrb[6].mxu0  ;;  %v482_v34 = vpop.f32.mrb[4].mxu1 }
 0x13d   : > { %v667_v33 = vpop.f32.mrb[7].mxu0  ;;  %v674_v35 = vpop.f32.mrb[5].mxu1  ;;  %v483_v47 = vadd.f32 %v624_v45, %v482_v34 }
 0x13e   : > { %v485_v36 = vpop.f32.mrb[6].mxu1 }
 0x13f   : > { %v675_v37 = vpop.f32.mrb[7].mxu1 }
 0x1c3   : > { %v276_v20 = vpop.xlane.xlu0 %275 }
 0x1c4   : > { %v277_v21 = vsub.f32 %v274_v13, %v276_v20 }
 0x1c6   : > { %v278_v22 = vmul.f32 1.442695, %v277_v21 }
 0x1c8   : > { %751 = vpow2.f32 %v278_v22 }
 0x1d2   : > { %v752_v23 = vpop.eup %751 }
 0x1d3   : > { %280 = vadd.xlane.f32.xlu0 %v752_v23 }
 0x260   : > { %v281_v38 = vpop.xlane.xlu0 %280 }
 0x261   : > { %753 = vrcp.f32 %v281_v38 }
 0x262   : > { %755 = vtanh.f32 %v342_v44 }
 0x263   : > { %757 = vtanh.f32 %v413_v46 }
 0x264   : > { %759 = vtanh.f32 %v483_v47 }
 0x26b   : > { %v754_v39 = vpop.eup %753 }
 0x26c   : > { %v283_v40 = vmul.f32 %v754_v39, %v752_v23  ;;  %v756_v49 = vpop.eup %755 }
 0x26d   : > { %v758_v50 = vpop.eup %757 }
 0x26e   : > { %490 = vperm.xlu0 %742, %v283_v40   ;;  %350 = vperm.xlu1 %740, %v283_v40   ;;  %v760_v51 = vpop.eup %759 }
 0x272   : > { %741 = vset.pattern.permute.xlu1 %v903_v41 }
 0x273   : > { %420 = vperm.xlu1 %741, %v283_v40  }
 0x2ed   : > { %v351_v48 = vpop.permute.xlu1 %350  ;;  %v491_v52 = vpop.permute.xlu0 %490 }
 0x2ee   : > { %v353_v54 = vmul.f32 %v756_v49, %v351_v48  ;;  %v493_v56 = vmul.f32 %v760_v51, %v491_v52 }
 0x2f2   : > { %v421_v53 = vpop.permute.xlu1 %420 }
 0x2f3   : > { %v423_v55 = vmul.f32 %v758_v50, %v421_v53 }
 0x2f5   : > { %v424_v57 = vadd.f32 %v423_v55, %v353_v54 }
 0x2f7   : > { %v494_v58 = vadd.f32 %v493_v56, %v424_v57 }
 0x2f9   : > { %v496_v59 = vsel %vm495_vm3, %v494_v58, -inf }
 0x2fa   : > { %497 = vmax.xlane.f32.xlu1 %v496_v59 }
 0x387   : > { %v498_v60 = vpop.xlane.xlu1 %497 }
 0x388   : > { %v499_v61 = vsub.f32 %v496_v59, %v498_v60 }
 0x38a   : > { %v500_v62 = vmul.f32 1.442695, %v499_v61 }
 0x38c   : > { %761 = vpow2.f32 %v500_v62 }
 0x396   : > { %v762_v63 = vpop.eup %761 }
 0x397   : > { %502 = vadd.xlane.f32.xlu1 %v762_v63 }
 0x424   : > { %v503_v0 = vpop.xlane.xlu1 %502 }
 0x425   : > { %763 = vlog2.f32 %v503_v0 }
 0x42f   : > { %v764_v1 = vpop.eup %763 }
 0x430   : > { %v505_v2 = vmul.f32 0.6931472, %v764_v1 }
 0x432   : > { %v506_v3 = vsub.f32 %v499_v61, %v505_v2 }
 0x434   : > { %507 = vst [vmem:[%s200_s11] sm:$0xff] %v506_v3 }
 0x435   : > { %836 = shalt.err (!%p833_p7)
}
 0x436   : > { %s837_s30 = scalar_lea.hbm %s1105_s23, 128  ;;  %s841_s25 = scalar_lea.hbm %s1152_s3, 256 }
 0x437   : > { %p838_p9 = scmp.ne.s32.totalorder %s1105_s23, %s837_s30  ;;  %p842_p0 = scmp.lt.u32.totalorder %s1105_s23, %s1152_s3 }
 0x438   : > { %p843_p11 = scmp.lt.u32.totalorder %s841_s25, %s837_s30  ;;  %p845_p4 = scmp.lt.u32.totalorder %s837_s30, %s1105_s23 }
 0x439   : > { %p839_p2 = pnand %p838_p9, %p1016_p12 }
 0x43a   : > { %p844_p1 = por %p843_p11, %p842_p0 }
 0x43b   : > { %p840_p5 = pneg %p839_p2 }
 0x43c   : > { %p846_p6 = por %p845_p4, %p844_p1 }
 0x43e   : > { %p847_p8 = pnand %p846_p6, %p840_p5 }
 0x440   : > { %850 = shalt.err (!%p847_p8)
}
 0x441   : > { %682 = dma.vmem_to_hbm [thread:$0]  (%p1016_p12), %s1107_s27, 128, %s1105_s23, %s509_s6  }
 0x442 PF: > { %s534_s8 = sand.u32 1, %s881_s12   ;;  %p1167_p10 = scmp.ne.s32.totalorder %s1157_s19, 0 }
 0x443   : > { %p1168_p13 = scmp.ge.s32.totalorder %s893_s15, 2  ;;  %s535_s9 = scalar_lea.sflag [#allocation4], %s534_s8 }
 0x445   : > { %p693_p3 = pnand %p1168_p13, %p1167_p10 }
 0x447   : > { %876 = dma.done.wait (!%p693_p3), %s535_s9, 128  }
 0x448   : > { %878 = vsyncadd (!%p693_p3), %s535_s9, 4294967168  ;;  %p17_p7 = scmp.ge.s32.totalorder %s981_s24, 4   ;;  %s1169_s12 = smov %s885_s13 }
 0x449   : > { %s1170_s13 = smov %s889_s14  ;;  %s1171_s14 = smov %s1012_s17 }
 0x44a   : > { %s1172_s15 = smov %s981_s24  ;;  %19 = sbr.rel (!%p17_p7) target bundleno = 6 (0x6), region = 81 }
 0x451   :  { %540 = vsyncpa [#allocation3], 1 }
 0x452   :  { %542 = vsyncpa [#allocation3 + $0x1], 1 }
 0x453   :  { %543 = vsyncpa [#allocation6], 1 }
 0x454   :  { %544 = vsyncpa [#allocation4], 1 }
 0x455   :  { %546 = vsyncpa [#allocation4 + $0x1], 1 }

// kernel: tpu_custom_call.1
= control target key start
LH: loop header
LB: loop body
LE: loop exit
PB: predicated region body
PF: predicated region fallthrough
CT: control target
= control target key end

     0   :  { %8 = vsyncpa [#allocation3], 0  ;;  %s1149_s0 = inlined_call_operand.hbm [shape: f32[16,32], index: 0, kind: input, shape index: {}]   ;;  %s1150_s1 = inlined_call_operand.hbm [shape: bf16[32,512], index: 1, kind: input, shape index: {}]   ;;  %s1151_s2 = inlined_call_operand.vmem [shape: f32[1,512], index: 2, kind: input, shape index: {}]   ;;  %s1152_s3 = inlined_call_operand.hbm [shape: f32[16,128], index: 3, kind: output, shape index: {}]  }
   0x1   :  { %10 = vsyncpa [#allocation3 + $0x1], 0 }
   0x2   :  { %11 = vsyncpa [#allocation6], 0 }
   0x3   :  { %12 = vsyncpa [#allocation4], 0 }
   0x4   :  { %14 = vsyncpa [#allocation4 + $0x1], 0  ;;  %s925_s12 = smov 0   ;;  %s927_s13 = smov 0  }
   0x5   :  { %s929_s14 = smov 0   ;;  %s931_s15 = smov 0  }
   0x6 LB: > { %s946_s16 = sadd.s32 4294967295, %s893_s15   ;;  %s602_s17 = sadd.s32 4294967294, %s893_s15   ;;  %s893_s15 = sphi %s931_s15, %s1172_s15   ;;  %s889_s14 = sphi %s929_s14, %s1171_s14   ;;  %s885_s13 = sphi %s927_s13, %s1170_s13   ;;  %s881_s12 = sphi %s925_s12, %s1169_s12  }
   0x7   : > { %p40_p0 = scmp.ne.s32.totalorder %s885_s13, %s881_s12  ;;  %p1153_p1 = scmp.eq.s32.totalorder %s946_s16, 0 }
   0x8   : > { %p112_p3 = scmp.eq.s32.totalorder %s602_s17, 1  ;;  %p603_p5 = scmp.ge.s32.totalorder %s893_s15, 1 }
   0x9   : > { %p955_p4 = por %p1153_p1, %p40_p0  ;;  %p119_p7 = scmp.lt.s32.totalorder %s893_s15, 3 }
   0xa   : > { %p960_p6 = por %p112_p3, %p40_p0  ;;  %s895_s21 = smov [#allocation5]  }
   0xb   : > { %s1156_s18 = scalar_select %p955_p4, 1, 0 }
   0xc   : > { %s1157_s19 = scalar_select %p960_p6, 1, 0 }
   0xd   : > { %p965_p8 = pnand %p603_p5, %p119_p7  ;;  %s131_s22 = sshll.u32 %s895_s21, 4  ;;  %s969_s22 = int_to_ptr.vmem [resolvable:$true] %s131_s22 }
   0xe   : > { %s981_s24 = sadd.s32 1, %s893_s15   ;;  %s27_s25 = sadd.s32 1, %s889_s14 }
   0xf   : > { %s1158_s20 = scalar_select %p965_p8, 1, 0 }
  0x10   : > { %p684_p9 = pneg %p965_p8  ;;  %s24_s26 = ssub.s32 %s893_s15, %s981_s24 }
  0x11   : > { %s765_s29 = scalar_lea.hbm %s1150_s1, 1024 }
  0x12   : > { %p976_p11 = pnand %p684_p9, %p1153_p1  ;;  %p766_p12 = scmp.ne.s32.totalorder %s1150_s1, %s765_s29 }
  0x13   : > { %p772_p5 = scmp.lt.u32.totalorder %s765_s29, %s1150_s1 }
  0x14   : > { %p767_p13 = pneg %p976_p11 }
  0x16   : > { %p768_p0 = pnand %p767_p13, %p766_p12 }
  0x18   : > { %p769_p3 = pneg %p768_p0 }
  0x1a   : > { %p774_p7 = pnand %p772_p5, %p769_p3 }
  0x1c   : > { %777 = shalt.err (!%p774_p7)
}
  0x1d   : > { %s778_s7 = scalar_lea.vmem %s969_s22, 1024  ;;  %p786_p2 = scmp.lt.s32.totalorder %s969_s22, %s969_s22 }
  0x1e   : > { %p779_p9 = scmp.ne.s32.totalorder %s969_s22, %s778_s7  ;;  %p787_p6 = scmp.lt.s32.totalorder %s778_s7, %s778_s7 }
  0x20   : > { %p781_p10 = pnand %p779_p9, %p767_p13  ;;  %p788_p4 = por %p787_p6, %p786_p2 }
  0x22   : > { %p782_p1 = pneg %p781_p10 }
  0x24   : > { %p789_p8 = pnand %p788_p4, %p782_p1 }
  0x26   : > { %792 = shalt.err (!%p789_p8)
}
  0x27   : > { %s896_s8 = smov 256   ;;  %s897_s9 = smov 16  }
  0x28   : > { %687 = dma.hbm_to_vmem [thread:$0]  (!%p976_p11), %s1150_s1, 1024, %s969_s22, [#allocation6], %s896_s8, %s896_s8, %s897_s9  }
  0x29   : > { %p25_p2 = scmp.eq.s32.totalorder %s24_s26, 0  ;;  %p34_p1 = scmp.ne.s32.totalorder %s889_s14, %s885_s13 }
  0x2a   : > { %p35_p4 = scmp.eq.s32.totalorder %s893_s15, 0  ;;  %p697_p6 = scmp.lt.s32.totalorder %s893_s15, 2 }
  0x2b   : > { %s1012_s17 = scalar_select %p25_p2, %s889_s14, %s27_s25  }
  0x2c   : > { %p36_p8 = por %p35_p4, %p34_p1  ;;  %p1160_p10 = scmp.eq.s32.totalorder %s946_s16, 1 }
  0x2d   : > { %s148_s27 = sand.u32 1, %s889_s14   ;;  %s607_s28 = sshll.u32 %s893_s15, 7 }
  0x2e   : > { %p1016_p12 = por %p1160_p10, %p34_p1  ;;  %s606_s29 = sshll.u32 %s148_s27, 3 }
  0x2f   : > { %s1025_s4 = scalar_lea.hbm %s1149_s0, %s607_s28  ;;  %s152_s22 = scalar_lea.vmem [#allocation2], %s606_s29 }
  0x30   : > { %s159_s25 = sshll.u32 %s152_s22, 4  ;;  %p1027_p11 = pnand %p697_p6, %p36_p8  ;;  %s1031_s25 = int_to_ptr.vmem [resolvable:$true] %s159_s25 }
  0x31   : > { %s149_s5 = scalar_lea.sflag [#allocation3], %s148_s27  ;;  %s793_s6 = scalar_lea.hbm %s1025_s4, 128 }
  0x32   : > { %p794_p13 = scmp.ne.s32.totalorder %s1025_s4, %s793_s6  ;;  %p795_p0 = pneg %p1027_p11 }
  0x33   : > { %s798_s9 = scalar_lea.hbm %s1149_s0, 256  ;;  %p799_p7 = scmp.lt.u32.totalorder %s1025_s4, %s1149_s0 }
  0x34   : > { %p796_p3 = pnand %p795_p0, %p794_p13  ;;  %p800_p9 = scmp.lt.u32.totalorder %s798_s9, %s793_s6 }
  0x35   : > { %p802_p1 = scmp.lt.u32.totalorder %s793_s6, %s1025_s4 }
  0x36   : > { %p797_p5 = pneg %p796_p3  ;;  %p801_p2 = por %p800_p9, %p799_p7 }
  0x38   : > { %p803_p4 = por %p802_p1, %p801_p2 }
  0x3a   : > { %p804_p6 = pnand %p803_p4, %p797_p5 }
  0x3c   : > { %807 = shalt.err (!%p804_p6)
}
  0x3d   : > { %s808_s27 = scalar_lea.vmem %s1031_s25, 128  ;;  %s898_s28 = smov [#allocation2]  }
  0x3e   : > { %p809_p8 = scmp.ne.s32.totalorder %s1031_s25, %s808_s27  ;;  %s813_s29 = sshll.u32 %s898_s28, 4  ;;  %s814_s29 = int_to_ptr.vmem [resolvable:$false] %s813_s29 }
  0x3f   : > { %s815_s23 = scalar_lea.vmem %s814_s29, 256  ;;  %p816_p3 = scmp.lt.s32.totalorder %s1031_s25, %s814_s29 }
  0x40   : > { %p811_p10 = pnand %p809_p8, %p795_p0  ;;  %p817_p7 = scmp.lt.s32.totalorder %s815_s23, %s808_s27 }
  0x42   : > { %p812_p13 = pneg %p811_p10  ;;  %p818_p9 = por %p817_p7, %p816_p3 }
  0x44   : > { %p819_p2 = pnand %p818_p9, %p812_p13 }
  0x46   : > { %822 = shalt.err (!%p819_p2)
}
  0x47   : > { %691 = dma.hbm_to_vmem [thread:$0]  (!%p1027_p11), %s1025_s4, 128, %s1031_s25, %s149_s5  }
  0x48   : > { %p1163_p5 = scmp.ne.s32.totalorder %s1158_s20, 0 }
  0x49   : > { %s1061_s30 = sand.u32 (!%p1163_p5), 1, %s885_s13   ;;  %p1164_p0 = scmp.ne.s32.totalorder (!%p1163_p5), %s1156_s18, 0 }
  0x4a   : > { %168 = sbr.rel (%p1163_p5) target bundleno = 1090 (0x442), region = 32  ;;  %s609_s22 = sshll.u32 (!%p1163_p5), %s1061_s30, 3 }
  0x4b   : > { %s171_s6 = scalar_lea.sflag (!%p1163_p5), [#allocation3], %s1061_s30  ;;  %s174_s7 = scalar_lea.vmem (!%p1163_p5), [#allocation2], %s609_s22 }
  0x51   : > { %868 = dma.done.wait (%p1164_p0), %s171_s6, 128  }
  0x52   : > { %870 = vsyncadd (%p1164_p0), %s171_s6, 4294967168  ;;  %p1165_p11 = scmp.eq.s32.totalorder %s946_s16, 0 }
  0x54   : > { %872 = dma.done.wait (%p1165_p11), [#allocation6], 1024   ;;  %p1166_p1 = pmov %p1165_p11 }
  0x55   : > { %v899_v0 = vmov 0.0   ;;  %vm900_vm0 = vmmov 0   ;;  %v743_v1 = vld [vmem:[#allocation5 + $0xc] ss:$16 sps:$4 sm:$0xff]   ;;  %vm227_vm1 = vcmask 261120   ;;  %v271_v5 = vlaneseq  ;;  %s629_s10 = sshll.u32 %s946_s16, 7 }
  0x56   : > { %874 = vsyncadd (%p1166_p1), [#allocation6], 4294966272  ;;  %644 = vmatprep.subr.bf16.mxu0 %v899_v0  ;;  %648 = vmatprep.mubr.msk.bf16.mxu0 %vm900_vm0, %v899_v0  ;;  %v744_v2 = vld [vmem:[#allocation5 + $0x2c] ss:$16 sps:$4 sm:$0xff]   ;;  %v612_v7 = vld [vmem:[%s1151_s2 + $0x3] ss:$0 sm:$0xff]  ;;  %s1105_s23 = scalar_lea.hbm %s1152_s3, %s629_s10 }
  0x57   : > { %652 = vmatprep.subr.bf16.mxu1 %v899_v0  ;;  %656 = vmatprep.mubr.msk.bf16.mxu1 %vm900_vm0, %v899_v0  ;;  %v202_v3 = vld [vmem:[%s174_s7] sm:$0xff]  ;;  %v1079_v6 = vand.u32 127, %v271_v5  ;;  %v901_v24 = vmov 2   ;;  %v902_v25 = vmov 0   ;;  %v903_v41 = vmov 1   ;;  %s200_s11 = scalar_lea.vmem [#allocation7], %s609_s22 }
  0x58   : > { %645 = vmatpush3.bf16.msra.mxu0 %v743_v1  ;;  %v203_v4 = vpack.c.bf16 %v202_v3, %v202_v3  ;;  %v745_v14 = vld [vmem:[#allocation5] ss:$16 sps:$4 sm:$0xff]   ;;  %v748_v15 = vld [vmem:[#allocation5 + $0x4] ss:$16 sps:$4 sm:$0xff]   ;;  %v747_v18 = vld [vmem:[#allocation5 + $0x8] ss:$16 sps:$4 sm:$0xff]   ;;  %742 = vset.pattern.permute.xlu0 %v901_v24 }
  0x59   : > { %646 = vmatprep.subr.bf16.mxu0 %v899_v0  ;;  %vm273_vm2 = vcmp.lt.s32.totalorder %v1079_v6, 3  ;;  %653 = vmatpush3.bf16.msra.mxu1 %v745_v14  ;;  %v746_v16 = vld [vmem:[#allocation5 + $0x20] ss:$16 sps:$4 sm:$0xff]   ;;  %v750_v17 = vld [vmem:[#allocation5 + $0x24] ss:$16 sps:$4 sm:$0xff]   ;;  %vm495_vm3 = vcmp.lt.s32.totalorder %v1079_v6, 16 }
  0x5a   : > { %654 = vmatprep.subr.bf16.mxu1 %v899_v0  ;;  %v749_v19 = vld [vmem:[#allocation5 + $0x28] ss:$16 sps:$4 sm:$0xff]   ;;  %740 = vset.pattern.permute.xlu1 %v902_v25  ;;  %v616_v42 = vld [vmem:[%s1151_s2] ss:$0 sm:$0xff]  ;;  %v620_v43 = vld [vmem:[%s1151_s2 + $0x1] ss:$0 sm:$0xff] }
  0x5b   : > { %v624_v45 = vld [vmem:[%s1151_s2 + $0x2] ss:$0 sm:$0xff]  ;;  %s522_s27 = sshll.u32 %s200_s11, 4  ;;  %s509_s6 = scalar_lea.sflag [#allocation4], %s1061_s30  ;;  %s1107_s27 = int_to_ptr.vmem [resolvable:$true] %s522_s27 }
  0x5c   : > { %647 = vmatpush3.bf16.msra.mxu0 %v744_v2  ;;  %s823_s7 = scalar_lea.vmem %s1107_s27, 128  ;;  %s904_s16 = smov [#allocation7]  }
  0x5d   : > { %660 = vmatprep.subr.bf16.mxu0 %v899_v0  ;;  %655 = vmatpush3.bf16.msra.mxu1 %v746_v16  ;;  %p824_p4 = scmp.ne.s32.totalorder %s1107_s27, %s823_s7  ;;  %s827_s22 = sshll.u32 %s904_s16, 4  ;;  %s828_s22 = int_to_ptr.vmem [resolvable:$false] %s827_s22 }
  0x5e   : > { %668 = vmatprep.subr.bf16.mxu1 %v899_v0  ;;  %s829_s18 = scalar_lea.vmem %s828_s22, 256  ;;  %p830_p10 = scmp.lt.s32.totalorder %s1107_s27, %s828_s22 }
  0x5f   : > { %649 = vmatmul.mubr.msk.bf16.vlgmr.msra.gmra.mrb[0].mxu0 %vm227_vm1, %v203_v4  ;;  %p825_p6 = pnand %p824_p4, %p1016_p12  ;;  %p831_p13 = scmp.lt.s32.totalorder %s829_s18, %s823_s7 }
  0x60   : > { %664 = vmatprep.mubr.msk.bf16.mxu0 %vm900_vm0, %v899_v0  ;;  %661 = vmatpush3.bf16.msra.mxu0 %v748_v15 }
  0x61   : > { %662 = vmatprep.subr.bf16.mxu0 %v899_v0  ;;  %657 = vmatmul.mubr.msk.bf16.vlgmr.msra.gmra.mrb[0].mxu1 %vm227_vm1, %v203_v4  ;;  %p826_p8 = pneg %p825_p6  ;;  %p832_p3 = por %p831_p13, %p830_p10 }
  0x62   : > { %669 = vmatpush3.bf16.msra.mxu1 %v747_v18  ;;  %672 = vmatprep.mubr.msk.bf16.mxu1 %vm900_vm0, %v899_v0 }
  0x63   : > { %670 = vmatprep.subr.bf16.mxu1 %v899_v0  ;;  %p833_p7 = pnand %p832_p3, %p826_p8 }
  0x64   : > { %663 = vmatpush3.bf16.msra.mxu0 %v750_v17 }
  0x66   : > { %671 = vmatpush3.bf16.msra.mxu1 %v749_v19 }
  0x67   : > { %665 = vmatmul.mubr.msk.bf16.vlgmr.msra.gmra.mrb[4].mxu0 %vm227_vm1, %v203_v4 }
  0x69   : > { %673 = vmatmul.mubr.msk.bf16.vlgmr.msra.gmra.mrb[4].mxu1 %vm227_vm1, %v203_v4 }
 0x132   : > { %v265_v8 = vpop.f32.mrb[0].mxu0 }
 0x133   : > { %v266_v9 = vadd.f32 %v612_v7, %v265_v8  ;;  %v650_v10 = vpop.f32.mrb[1].mxu0 }
 0x134   : > { %v268_v11 = vpop.f32.mrb[2].mxu0  ;;  %v341_v26 = vpop.f32.mrb[0].mxu1 }
 0x135   : > { %v651_v12 = vpop.f32.mrb[3].mxu0  ;;  %v274_v13 = vsel %vm273_vm2, %v266_v9, -inf  ;;  %v658_v27 = vpop.f32.mrb[1].mxu1  ;;  %v342_v44 = vadd.f32 %v616_v42, %v341_v26 }
 0x136   : > { %275 = vmax.xlane.f32.xlu0 %v274_v13  ;;  %v344_v28 = vpop.f32.mrb[2].mxu1 }
 0x137   : > { %v659_v30 = vpop.f32.mrb[3].mxu1 }
 0x13a   : > { %v412_v29 = vpop.f32.mrb[4].mxu0 }
 0x13b   : > { %v666_v31 = vpop.f32.mrb[5].mxu0  ;;  %v413_v46 = vadd.f32 %v620_v43, %v412_v29 }
 0x13c   : > { %v415_v32 = vpop.f32.mrb[6].mxu0  ;;  %v482_v34 = vpop.f32.mrb[4].mxu1 }
 0x13d   : > { %v667_v33 = vpop.f32.mrb[7].mxu0  ;;  %v674_v35 = vpop.f32.mrb[5].mxu1  ;;  %v483_v47 = vadd.f32 %v624_v45, %v482_v34 }
 0x13e   : > { %v485_v36 = vpop.f32.mrb[6].mxu1 }
 0x13f   : > { %v675_v37 = vpop.f32.mrb[7].mxu1 }
 0x1c3   : > { %v276_v20 = vpop.xlane.xlu0 %275 }
 0x1c4   : > { %v277_v21 = vsub.f32 %v274_v13, %v276_v20 }
 0x1c6   : > { %v278_v22 = vmul.f32 1.442695, %v277_v21 }
 0x1c8   : > { %751 = vpow2.f32 %v278_v22 }
 0x1d2   : > { %v752_v23 = vpop.eup %751 }
 0x1d3   : > { %280 = vadd.xlane.f32.xlu0 %v752_v23 }
 0x260   : > { %v281_v38 = vpop.xlane.xlu0 %280 }
 0x261   : > { %753 = vrcp.f32 %v281_v38 }
 0x262   : > { %755 = vtanh.f32 %v342_v44 }
 0x263   : > { %757 = vtanh.f32 %v413_v46 }
 0x264   : > { %759 = vtanh.f32 %v483_v47 }
 0x26b   : > { %v754_v39 = vpop.eup %753 }
 0x26c   : > { %v283_v40 = vmul.f32 %v754_v39, %v752_v23  ;;  %v756_v49 = vpop.eup %755 }
 0x26d   : > { %v758_v50 = vpop.eup %757 }
 0x26e   : > { %490 = vperm.xlu0 %742, %v283_v40   ;;  %350 = vperm.xlu1 %740, %v283_v40   ;;  %v760_v51 = vpop.eup %759 }
 0x272   : > { %741 = vset.pattern.permute.xlu1 %v903_v41 }
 0x273   : > { %420 = vperm.xlu1 %741, %v283_v40  }
 0x2ed   : > { %v351_v48 = vpop.permute.xlu1 %350  ;;  %v491_v52 = vpop.permute.xlu0 %490 }
 0x2ee   : > { %v353_v54 = vmul.f32 %v756_v49, %v351_v48  ;;  %v493_v56 = vmul.f32 %v760_v51, %v491_v52 }
 0x2f2   : > { %v421_v53 = vpop.permute.xlu1 %420 }
 0x2f3   : > { %v423_v55 = vmul.f32 %v758_v50, %v421_v53 }
 0x2f5   : > { %v424_v57 = vadd.f32 %v423_v55, %v353_v54 }
 0x2f7   : > { %v494_v58 = vadd.f32 %v493_v56, %v424_v57 }
 0x2f9   : > { %v496_v59 = vsel %vm495_vm3, %v494_v58, -inf }
 0x2fa   : > { %497 = vmax.xlane.f32.xlu1 %v496_v59 }
 0x387   : > { %v498_v60 = vpop.xlane.xlu1 %497 }
 0x388   : > { %v499_v61 = vsub.f32 %v496_v59, %v498_v60 }
 0x38a   : > { %v500_v62 = vmul.f32 1.442695, %v499_v61 }
 0x38c   : > { %761 = vpow2.f32 %v500_v62 }
 0x396   : > { %v762_v63 = vpop.eup %761 }
 0x397   : > { %502 = vadd.xlane.f32.xlu1 %v762_v63 }
 0x424   : > { %v503_v0 = vpop.xlane.xlu1 %502 }
 0x425   : > { %763 = vlog2.f32 %v503_v0 }
 0x42f   : > { %v764_v1 = vpop.eup %763 }
 0x430   : > { %v505_v2 = vmul.f32 0.6931472, %v764_v1 }
 0x432   : > { %v506_v3 = vsub.f32 %v499_v61, %v505_v2 }
 0x434   : > { %507 = vst [vmem:[%s200_s11] sm:$0xff] %v506_v3 }
 0x435   : > { %836 = shalt.err (!%p833_p7)
}
 0x436   : > { %s837_s30 = scalar_lea.hbm %s1105_s23, 128  ;;  %s841_s25 = scalar_lea.hbm %s1152_s3, 256 }
 0x437   : > { %p838_p9 = scmp.ne.s32.totalorder %s1105_s23, %s837_s30  ;;  %p842_p0 = scmp.lt.u32.totalorder %s1105_s23, %s1152_s3 }
 0x438   : > { %p843_p11 = scmp.lt.u32.totalorder %s841_s25, %s837_s30  ;;  %p845_p4 = scmp.lt.u32.totalorder %s837_s30, %s1105_s23 }
 0x439   : > { %p839_p2 = pnand %p838_p9, %p1016_p12 }
 0x43a   : > { %p844_p1 = por %p843_p11, %p842_p0 }
 0x43b   : > { %p840_p5 = pneg %p839_p2 }
 0x43c   : > { %p846_p6 = por %p845_p4, %p844_p1 }
 0x43e   : > { %p847_p8 = pnand %p846_p6, %p840_p5 }
 0x440   : > { %850 = shalt.err (!%p847_p8)
}
 0x441   : > { %682 = dma.vmem_to_hbm [thread:$0]  (%p1016_p12), %s1107_s27, 128, %s1105_s23, %s509_s6  }
 0x442 PF: > { %s534_s8 = sand.u32 1, %s881_s12   ;;  %p1167_p10 = scmp.ne.s32.totalorder %s1157_s19, 0 }
 0x443   : > { %p1168_p13 = scmp.ge.s32.totalorder %s893_s15, 2  ;;  %s535_s9 = scalar_lea.sflag [#allocation4], %s534_s8 }
 0x445   : > { %p693_p3 = pnand %p1168_p13, %p1167_p10 }
 0x447   : > { %876 = dma.done.wait (!%p693_p3), %s535_s9, 128  }
 0x448   : > { %878 = vsyncadd (!%p693_p3), %s535_s9, 4294967168  ;;  %p17_p7 = scmp.ge.s32.totalorder %s981_s24, 4   ;;  %s1169_s12 = smov %s885_s13 }
 0x449   : > { %s1170_s13 = smov %s889_s14  ;;  %s1171_s14 = smov %s1012_s17 }
 0x44a   : > { %s1172_s15 = smov %s981_s24  ;;  %19 = sbr.rel (!%p17_p7) target bundleno = 6 (0x6), region = 81 }
 0x451   :  { %540 = vsyncpa [#allocation3], 1 }
 0x452   :  { %542 = vsyncpa [#allocation3 + $0x1], 1 }
 0x453   :  { %543 = vsyncpa [#allocation6], 1 }
 0x454   :  { %544 = vsyncpa [#allocation4], 1 }
 0x455   :  { %546 = vsyncpa [#allocation4 + $0x1], 1 }

</bundles_post_ra>
